<compile_context>
chip_gen: v7x
topology: tpu7x:2x2x1
jax: 0.10.0
libtpu: 0.0.40
codegen_flags: <defaults>
</compile_context>

<pallas_src>
import jax
import jax.numpy as jnp
from jax.experimental import pallas as pl
from jax.experimental.pallas import tpu as pltpu

HIDDEN_SIZE = 32
INITIAL_POLICY_LOGSTD = 0.0
LANE = 128
SUBLANE = 8
# Batches at/above this many (padded) rows use the narrow 8-wide output pad to
# cut HBM writeback; below it, the 128-wide lane-dense pad gives unmasked
# full-lane stores (measured to be the better layout for small outputs).
NARROW_OUTPUT_BATCH = 4096


def _round_up(x, m):
    return (x + m - 1) // m * m


def _num_tensorcores():
    """Best-effort TensorCore-per-device count (2 on v7x, 1 on v5e/v6e).
    Falls back to 1 if the attribute is unavailable -- always safe."""
    try:
        return max(1, min(2, int(getattr(jax.devices()[0], "num_cores", 1))))
    except Exception:
        return 1


def _actor_kernel(x_ref, w1_ref, b1_ref, w2_ref, b2_ref, wm_ref, bm_ref,
                  mean_ref):
    """One batch tile of the 3-layer MLP.  Weights/biases are VMEM-resident
    across grid iterations (constant-index BlockSpecs)."""
    x = x_ref[...]

    # fc1 + relu
    h1 = jnp.dot(x, w1_ref[...], preferred_element_type=jnp.float32) + b1_ref[...]
    h1 = jnp.maximum(h1, 0.0)

    # fc2 + relu
    h2 = jnp.dot(h1, w2_ref[...], preferred_element_type=jnp.float32) + b2_ref[...]
    h2 = jnp.maximum(h2, 0.0)

    # fc_mean (output columns zero-padded to the chosen output width)
    mean = jnp.dot(h2, wm_ref[...], preferred_element_type=jnp.float32) + bm_ref[...]
    mean_ref[...] = mean.astype(mean_ref.dtype)


def actor_forward(states, params, *, block_batch=1024):
    """Fused Actor MLP forward pass.

    states: [batch, dim_states] float32
    params: dict from init_actor_params (includes pre-padded fc_mean weights)
    returns (action_mean [batch, A], action_logstd [batch, A])
    """
    batch, dim_states = states.shape
    hidden = params["w1"].shape[1]
    dim_actions = params["wm"].shape[1]

    # ---- batch tile sizing (sublane-aligned, large tiles, >=2 steps on 2-TC chips)
    block_batch = _round_up(max(block_batch, SUBLANE), SUBLANE)
    padded_batch = _round_up(batch, SUBLANE)
    num_cores = _num_tensorcores()
    if padded_batch <= block_batch:
        if num_cores > 1 and padded_batch >= num_cores * SUBLANE:
            # Split into balanced tiles so "parallel" grid axis covers both TCs.
            tb = _round_up(-(-padded_batch // num_cores), SUBLANE)
        else:
            tb = padded_batch                      # single big tile (v5e/v6e)
    else:
        tb = block_batch
    padded_batch = _round_up(padded_batch, tb)
    grid = (padded_batch // tb,)

    # ---- output padding variant (precomputed at init; no per-call padding) ----
    if padded_batch >= NARROW_OUTPUT_BATCH:
        wm_p, bm_p = params["wm_p8"], params["bm_p8"]        # narrow: less HBM writeback
    else:
        wm_p, bm_p = params["wm_p128"], params["bm_p128"]    # lane-dense: unmasked vst
    out_pad = wm_p.shape[1]

    if padded_batch != batch:
        states = jnp.pad(states, ((0, padded_batch - batch), (0, 0)))

    # Activations/outputs: tiled & pipelined along the batch grid axis.
    x_spec = pl.BlockSpec((tb, dim_states), lambda i: (i, 0))
    out_spec = pl.BlockSpec((tb, out_pad), lambda i: (i, 0))
    # Weights/biases: constant block index -> DMA'd once, stay VMEM-resident.
    w1_spec = pl.BlockSpec((dim_states, hidden), lambda i: (0, 0))
    b1_spec = pl.BlockSpec((1, hidden), lambda i: (0, 0))
    w2_spec = pl.BlockSpec((hidden, hidden), lambda i: (0, 0))
    b2_spec = pl.BlockSpec((1, hidden), lambda i: (0, 0))
    wm_spec = pl.BlockSpec((hidden, out_pad), lambda i: (0, 0))
    bm_spec = pl.BlockSpec((1, out_pad), lambda i: (0, 0))

    flops = 2 * padded_batch * (dim_states * hidden + hidden * hidden
                                + hidden * out_pad)
    bytes_accessed = 4 * (padded_batch * (dim_states + out_pad)
                          + dim_states * hidden + hidden
                          + hidden * hidden + hidden
                          + hidden * out_pad + out_pad)
    cost = pl.CostEstimate(flops=flops, transcendentals=0,
                           bytes_accessed=bytes_accessed)

    mean_padded = pl.pallas_call(
        _actor_kernel,
        out_shape=jax.ShapeDtypeStruct((padded_batch, out_pad), jnp.float32),
        grid=grid,
        in_specs=[x_spec, w1_spec, b1_spec, w2_spec, b2_spec, wm_spec, bm_spec],
        out_specs=out_spec,
        compiler_params=pltpu.CompilerParams(
            dimension_semantics=("parallel",),      # v7x: shard batch over 2 TCs
            vmem_limit_bytes=16 * 1024 * 1024,      # few-hundred-KiB actual use
        ),
        cost_estimate=cost,
    )(states, params["w1"], params["b1"], params["w2"], params["b2"],
      wm_p, bm_p)

    mean = mean_padded[:batch, :dim_actions]
    # fc_logstd.expand_as(mean): pure parameter broadcast, done outside kernel.
    logstd = jnp.broadcast_to(params["logstd"], mean.shape)
    return mean, logstd


def init_actor_params(key, dim_states, dim_actions, hidden_size=HIDDEN_SIZE):
    """Deterministic init mimicking nn.Linear default (uniform +-1/sqrt(fan_in)).

    Weights are stored as [in, out] (pre-transposed relative to PyTorch).
    fc_mean padding variants are precomputed here (hoisted off the hot path)."""
    k1, k2, k3, k4, k5, k6 = jax.random.split(key, 6)

    def linear(kw, kb, fan_in, fan_out):
        bound = 1.0 / jnp.sqrt(fan_in)
        w = jax.random.uniform(kw, (fan_in, fan_out), jnp.float32, -bound, bound)
        b = jax.random.uniform(kb, (1, fan_out), jnp.float32, -bound, bound)
        return w, b

    w1, b1 = linear(k1, k2, dim_states, hidden_size)
    w2, b2 = linear(k3, k4, hidden_size, hidden_size)
    wm, bm = linear(k5, k6, hidden_size, dim_actions)
    logstd = INITIAL_POLICY_LOGSTD * jnp.ones((1, dim_actions), jnp.float32)

    params = {"w1": w1, "b1": b1, "w2": w2, "b2": b2,
              "wm": wm, "bm": bm, "logstd": logstd}

    # Pre-padded fc_mean variants (done once, not per forward call).
    out128 = _round_up(max(dim_actions, LANE), LANE)
    out8 = _round_up(dim_actions, SUBLANE)
    params["wm_p128"] = jnp.zeros((hidden_size, out128), jnp.float32).at[
        :, :dim_actions].set(wm)
    params["bm_p128"] = jnp.zeros((1, out128), jnp.float32).at[
        :, :dim_actions].set(bm)
    params["wm_p8"] = jnp.zeros((hidden_size, out8), jnp.float32).at[
        :, :dim_actions].set(wm)
    params["bm_p8"] = jnp.zeros((1, out8), jnp.float32).at[
        :, :dim_actions].set(bm)
    return params


def actor_forward_ref(states, p):
    """Plain-JAX reference for correctness checking."""
    h1 = jnp.maximum(states @ p["w1"] + p["b1"], 0.0)
    h2 = jnp.maximum(h1 @ p["w2"] + p["b2"], 0.0)
    mean = h2 @ p["wm"] + p["bm"]
    logstd = jnp.broadcast_to(p["logstd"], mean.shape)
    return mean, logstd


if __name__ == "__main__":
    # LunarLanderContinuous-v2: 8 state dims, 2 action dims.
    dim_states, dim_actions = 8, 2

    key = jax.random.PRNGKey(0)
    k_params, k_small, k_mid, k_big = jax.random.split(key, 4)
    params = init_actor_params(k_params, dim_states, dim_actions)

    fwd = jax.jit(actor_forward)   # pad/slice/broadcast fuse with the kernel

    # Small batch (exercises batch padding to the 8-sublane tile, single step).
    states_small = jax.random.normal(k_small, (4, dim_states), jnp.float32)
    mean_s, logstd_s = fwd(states_small, params)
    jax.block_until_ready((mean_s, logstd_s))
    mean_s_ref, logstd_s_ref = actor_forward_ref(states_small, params)
    assert mean_s.shape == (4, dim_actions)
    assert logstd_s.shape == (4, dim_actions)
    assert jnp.allclose(mean_s, mean_s_ref, atol=1e-5, rtol=1e-5)
    assert jnp.allclose(logstd_s, logstd_s_ref, atol=1e-6, rtol=1e-6)

    # Moderate batch (single big tile, or two balanced tiles on a 2-TC chip).
    states_mid = jax.random.normal(k_mid, (200, dim_states), jnp.float32)
    mean_m, logstd_m = fwd(states_mid, params)
    jax.block_until_ready((mean_m, logstd_m))
    mean_m_ref, logstd_m_ref = actor_forward_ref(states_mid, params)
    assert mean_m.shape == (200, dim_actions)
    assert jnp.allclose(mean_m, mean_m_ref, atol=1e-5, rtol=1e-5)
    assert jnp.allclose(logstd_m, logstd_m_ref, atol=1e-6, rtol=1e-6)

    # Large rollout batch (multi-tile pipelined grid + narrow writeback path).
    states_big = jax.random.normal(k_big, (8192, dim_states), jnp.float32)
    mean_b, logstd_b = fwd(states_big, params)
    jax.block_until_ready((mean_b, logstd_b))
    mean_b_ref, logstd_b_ref = actor_forward_ref(states_big, params)
    assert mean_b.shape == (8192, dim_actions)
    assert jnp.allclose(mean_b, mean_b_ref, atol=1e-4, rtol=1e-4)
    assert jnp.allclose(logstd_b, logstd_b_ref, atol=1e-6, rtol=1e-6)

    print("KERNEL_OK")
</pallas_src>

<mosaic_0001>
module attributes {stable_mosaic.version = 11 : i64} {
  func.func @_actor_kernel(%arg0: i32, %arg1: memref<8x8xf32, #tpu.memory_space<vmem>>, %arg2: memref<8x32xf32, #tpu.memory_space<vmem>>, %arg3: memref<1x32xf32, #tpu.memory_space<vmem>>, %arg4: memref<32x32xf32, #tpu.memory_space<vmem>>, %arg5: memref<1x32xf32, #tpu.memory_space<vmem>>, %arg6: memref<32x128xf32, #tpu.memory_space<vmem>>, %arg7: memref<1x128xf32, #tpu.memory_space<vmem>>, %arg8: memref<8x128xf32, #tpu.memory_space<vmem>>) attributes {dimension_semantics = [#tpu.dimension_semantics<parallel>], iteration_bounds = array<i64: 1>, scalar_prefetch = 0 : i64, scratch_operands = 0 : i64, tpu.core_type = #tpu.core_type<tc>, window_params = [{transform_indices = @transform_0, window_bounds = array<i64: 8, 8>}, {pipeline_mode = #tpu.pipeline_mode<synchronous>, transform_indices = @transform_1, window_bounds = array<i64: 8, 32>}, {pipeline_mode = #tpu.pipeline_mode<synchronous>, transform_indices = @transform_2, window_bounds = array<i64: 1, 32>}, {pipeline_mode = #tpu.pipeline_mode<synchronous>, transform_indices = @transform_3, window_bounds = array<i64: 32, 32>}, {pipeline_mode = #tpu.pipeline_mode<synchronous>, transform_indices = @transform_4, window_bounds = array<i64: 1, 32>}, {pipeline_mode = #tpu.pipeline_mode<synchronous>, transform_indices = @transform_5, window_bounds = array<i64: 32, 128>}, {pipeline_mode = #tpu.pipeline_mode<synchronous>, transform_indices = @transform_6, window_bounds = array<i64: 1, 128>}, {transform_indices = @transform_7, window_bounds = array<i64: 8, 128>}]} {
    %c0 = arith.constant 0 : index
    %c0_0 = arith.constant 0 : index
    %0 = vector.load %arg1[%c0, %c0_0] : memref<8x8xf32, #tpu.memory_space<vmem>>, vector<8x8xf32>
    %c0_1 = arith.constant 0 : index
    %c0_2 = arith.constant 0 : index
    %1 = vector.load %arg2[%c0_1, %c0_2] : memref<8x32xf32, #tpu.memory_space<vmem>>, vector<8x32xf32>
    %cst = arith.constant dense<0.000000e+00> : vector<8x32xf32>
    %2 = tpu.matmul %0, %1, %cst {dimension_numbers = #tpu.dot_dimension_numbers<[1], [0], [0], [1], [0, 0, 1, 1], [], []>} : vector<8x8xf32>, vector<8x32xf32>, vector<8x32xf32> -> vector<8x32xf32>
    %c0_3 = arith.constant 0 : index
    %c0_4 = arith.constant 0 : index
    %3 = vector.load %arg3[%c0_3, %c0_4] : memref<1x32xf32, #tpu.memory_space<vmem>>, vector<1x32xf32>
    %4 = vector.broadcast %3 : vector<1x32xf32> to vector<8x32xf32>
    %5 = arith.addf %2, %4 : vector<8x32xf32>
    %cst_5 = arith.constant 0.000000e+00 : f32
    %6 = vector.broadcast %cst_5 : f32 to vector<8x32xf32>
    %7 = arith.maximumf %5, %6 : vector<8x32xf32>
    %c0_6 = arith.constant 0 : index
    %c0_7 = arith.constant 0 : index
    %8 = vector.load %arg4[%c0_6, %c0_7] : memref<32x32xf32, #tpu.memory_space<vmem>>, vector<32x32xf32>
    %cst_8 = arith.constant dense<0.000000e+00> : vector<8x32xf32>
    %9 = tpu.matmul %7, %8, %cst_8 {dimension_numbers = #tpu.dot_dimension_numbers<[1], [0], [0], [1], [0, 0, 1, 1], [], []>} : vector<8x32xf32>, vector<32x32xf32>, vector<8x32xf32> -> vector<8x32xf32>
    %c0_9 = arith.constant 0 : index
    %c0_10 = arith.constant 0 : index
    %10 = vector.load %arg5[%c0_9, %c0_10] : memref<1x32xf32, #tpu.memory_space<vmem>>, vector<1x32xf32>
    %11 = vector.broadcast %10 : vector<1x32xf32> to vector<8x32xf32>
    %12 = arith.addf %9, %11 : vector<8x32xf32>
    %cst_11 = arith.constant 0.000000e+00 : f32
    %13 = vector.broadcast %cst_11 : f32 to vector<8x32xf32>
    %14 = arith.maximumf %12, %13 : vector<8x32xf32>
    %c0_12 = arith.constant 0 : index
    %c0_13 = arith.constant 0 : index
    %15 = vector.load %arg6[%c0_12, %c0_13] : memref<32x128xf32, #tpu.memory_space<vmem>>, vector<32x128xf32>
    %cst_14 = arith.constant dense<0.000000e+00> : vector<8x128xf32>
    %16 = tpu.matmul %14, %15, %cst_14 {dimension_numbers = #tpu.dot_dimension_numbers<[1], [0], [0], [1], [0, 0, 1, 1], [], []>} : vector<8x32xf32>, vector<32x128xf32>, vector<8x128xf32> -> vector<8x128xf32>
    %c0_15 = arith.constant 0 : index
    %c0_16 = arith.constant 0 : index
    %17 = vector.load %arg7[%c0_15, %c0_16] : memref<1x128xf32, #tpu.memory_space<vmem>>, vector<1x128xf32>
    %18 = vector.broadcast %17 : vector<1x128xf32> to vector<8x128xf32>
    %19 = arith.addf %16, %18 : vector<8x128xf32>
    %c0_17 = arith.constant 0 : index
    %c0_18 = arith.constant 0 : index
    %20 = vector.load %arg8[%c0_17, %c0_18] : memref<8x128xf32, #tpu.memory_space<vmem>>, vector<8x128xf32>
    tpu.vector_store %arg8[%c0_17, %c0_18], %19 {strides = array<i32>} : memref<8x128xf32, #tpu.memory_space<vmem>>, vector<8x128xf32>,
    return
  }
  func.func @transform_0(%arg0: i32) -> (i32, i32) {
    %c0_i32 = arith.constant 0 : i32
    %c0_i32_0 = arith.constant 0 : i32
    return %arg0, %c0_i32 : i32, i32
  }
  func.func @transform_1(%arg0: i32) -> (i32, i32) {
    %c0_i32 = arith.constant 0 : i32
    %c0_i32_0 = arith.constant 0 : i32
    %c0_i32_1 = arith.constant 0 : i32
    return %c0_i32, %c0_i32_0 : i32, i32
  }
  func.func @transform_2(%arg0: i32) -> (i32, i32) {
    %c0_i32 = arith.constant 0 : i32
    %c0_i32_0 = arith.constant 0 : i32
    %c0_i32_1 = arith.constant 0 : i32
    return %c0_i32, %c0_i32_0 : i32, i32
  }
  func.func @transform_3(%arg0: i32) -> (i32, i32) {
    %c0_i32 = arith.constant 0 : i32
    %c0_i32_0 = arith.constant 0 : i32
    %c0_i32_1 = arith.constant 0 : i32
    return %c0_i32, %c0_i32_0 : i32, i32
  }
  func.func @transform_4(%arg0: i32) -> (i32, i32) {
    %c0_i32 = arith.constant 0 : i32
    %c0_i32_0 = arith.constant 0 : i32
    %c0_i32_1 = arith.constant 0 : i32
    return %c0_i32, %c0_i32_0 : i32, i32
  }
  func.func @transform_5(%arg0: i32) -> (i32, i32) {
    %c0_i32 = arith.constant 0 : i32
    %c0_i32_0 = arith.constant 0 : i32
    %c0_i32_1 = arith.constant 0 : i32
    return %c0_i32, %c0_i32_0 : i32, i32
  }
  func.func @transform_6(%arg0: i32) -> (i32, i32) {
    %c0_i32 = arith.constant 0 : i32
    %c0_i32_0 = arith.constant 0 : i32
    %c0_i32_1 = arith.constant 0 : i32
    return %c0_i32, %c0_i32_0 : i32, i32
  }
  func.func @transform_7(%arg0: i32) -> (i32, i32) {
    %c0_i32 = arith.constant 0 : i32
    %c0_i32_0 = arith.constant 0 : i32
    return %arg0, %c0_i32 : i32, i32
  }
}

</mosaic_0001>

<bundles_post_ra>
// kernel: actor_forward.1
= control target key start
LH: loop header
LB: loop body
LE: loop exit
PB: predicated region body
PF: predicated region fallthrough
CT: control target
= control target key end

     0   :  { %12 = vsyncpa [#allocation3], 0  ;;  %s516_s0 = inlined_call_operand.vmem [shape: f32[8,8], index: 0, kind: input, shape index: {}]   ;;  %s517_s1 = inlined_call_operand.vmem [shape: f32[8,32], index: 1, kind: input, shape index: {}]   ;;  %s518_s2 = inlined_call_operand.vmem [shape: f32[1,32], index: 2, kind: input, shape index: {}]   ;;  %s519_s3 = inlined_call_operand.hbm [shape: f32[32,32], index: 3, kind: input, shape index: {}]   ;;  %s520_s4 = inlined_call_operand.vmem [shape: f32[1,32], index: 4, kind: input, shape index: {}]   ;;  %s521_s5 = inlined_call_operand.hbm [shape: f32[32,128], index: 5, kind: input, shape index: {}]   ;;  %s522_s6 = inlined_call_operand.vmem [shape: f32[1,128], index: 6, kind: input, shape index: {}]   ;;  %s523_s7 = inlined_call_operand.vmem [shape: f32[8,128], index: 7, kind: output, shape index: {}]  }
   0x1   :  { %13 = vsyncpa [#allocation5], 0  ;;  %s427_s24 = smov [#allocation2]   ;;  %s379_s28 = scalar_lea.hbm %s519_s3, 512 }
   0x2   :  { %s25_s25 = sshll.u32 %s427_s24, 4  ;;  %p380_p0 = scmp.ne.s32.totalorder %s519_s3, %s379_s28  ;;  %s26_s25 = int_to_ptr.vmem [resolvable:$true] %s25_s25 }
   0x3   :  { %p383_p1 = scmp.lt.u32.totalorder %s379_s28, %s519_s3 }
   0x5   :  { %p385_p2 = pnand %p383_p1, %p380_p0 }
   0x7   :  { %388 = shalt.err (!%p385_p2)
}
   0x8   :  { %s389_s10 = scalar_lea.vmem %s26_s25, 512  ;;  %p394_p4 = scmp.lt.s32.totalorder %s26_s25, %s26_s25 }
   0x9   :  { %p390_p3 = scmp.ne.s32.totalorder %s26_s25, %s389_s10  ;;  %p395_p5 = scmp.lt.s32.totalorder %s389_s10, %s389_s10 }
   0xb   :  { %p396_p6 = por %p395_p5, %p394_p4 }
   0xd   :  { %p397_p7 = pnand %p396_p6, %p390_p3 }
   0xf   :  { %400 = shalt.err (!%p397_p7)
}
  0x10   :  { %s428_s11 = smov 128   ;;  %s429_s12 = smov 8  }
  0x11   :  { %31 = dma.hbm_to_vmem [thread:$0]  %s519_s3, 512, %s26_s25, [#allocation3], %s428_s11, %s428_s11, %s429_s12  }
  0x12   :  { %s430_s15 = smov [#allocation4]   ;;  %s401_s19 = scalar_lea.hbm %s521_s5, 512 }
  0x13   :  { %s39_s16 = sshll.u32 %s430_s15, 4  ;;  %p402_p8 = scmp.ne.s32.totalorder %s521_s5, %s401_s19  ;;  %s40_s16 = int_to_ptr.vmem [resolvable:$true] %s39_s16 }
  0x14   :  { %p405_p9 = scmp.lt.u32.totalorder %s401_s19, %s521_s5 }
  0x16   :  { %p407_p10 = pnand %p405_p9, %p402_p8 }
  0x18   :  { %410 = shalt.err (!%p407_p10)
}
  0x19   :  { %s411_s24 = scalar_lea.vmem %s40_s16, 512  ;;  %p416_p12 = scmp.lt.s32.totalorder %s40_s16, %s40_s16 }
  0x1a   :  { %p412_p11 = scmp.ne.s32.totalorder %s40_s16, %s411_s24  ;;  %p417_p13 = scmp.lt.s32.totalorder %s411_s24, %s411_s24 }
  0x1c   :  { %p418_p0 = por %p417_p13, %p416_p12 }
  0x1e   :  { %p419_p1 = pnand %p418_p0, %p412_p11 }
  0x20   :  { %422 = shalt.err (!%p419_p1)
}
  0x21   :  { %45 = dma.hbm_to_vmem [thread:$0]  %s521_s5, 512, %s40_s16, [#allocation5], %s428_s11, %s428_s11, %s429_s12  }
  0x22   :  { %423 = dma.done.wait [#allocation3], 512  }
  0x23   :  { %424 = vsyncadd [#allocation3], 4294966784 }
  0x24   :  { %425 = dma.done.wait [#allocation5], 512  }
  0x25   :  { %426 = vsyncadd [#allocation5], 4294966784  ;;  %v431_v0 = vmov 0.0   ;;  %vm432_vm0 = vmmov 0   ;;  %v433_v1 = vmov 0.0|0.0   ;;  %vm63_vm1 = vcmask 64512  }
  0x26   :  { %333 = vmatprep.subr.mxu0 %v431_v0  ;;  %335 = vmatprep.mubr.msk.f32.mxu0 %vm432_vm0, %v431_v0  ;;  %v55_v2 = vld [vmem:[%s517_s1] sm:$0xff]  ;;  %v139_v5 = vld [vmem:[#allocation2 + $0x8] sm:$0xff]  ;;  %v140_v7 = vld [vmem:[#allocation2 + $0x10] sm:$0xff]  ;;  %vm149_vm2 = vcmask 261120  }
  0x27   :  { %360 = vmatprep.subr.bf16.mxu1 %v433_v1  ;;  %346 = vmatprep.mubr.msk.f32.mxu1 %vm432_vm0, %v431_v0  ;;  %v54_v3 = vld [vmem:[%s516_s0] sm:$0xff]  ;;  %v141_v8 = vld [vmem:[#allocation2 + $0x18] sm:$0xff]  ;;  %v225_v11 = vld [vmem:[#allocation4 + $0x8] sm:$0xff] }
  0x28   :  { %v138_v4 = vld [vmem:[#allocation2] sm:$0xff]  ;;  %334 = vmatpush3.msra.mxu0 %v55_v2  ;;  %v364_v9 = vpack.c.bf16 %v141_v8, %v140_v7  ;;  %v226_v18 = vld [vmem:[#allocation4 + $0x10] sm:$0xff]  ;;  %v227_v19 = vld [vmem:[#allocation4 + $0x18] sm:$0xff] }
  0x29   :  { %336 = vmatmul.mubr.msk.f32.vlgmr.msra.gmra.mrb[0].mxu0 %vm63_vm1, %v54_v3  ;;  %v361_v6 = vpack.c.bf16 %v139_v5, %v138_v4  ;;  %366 = vmatprep.subr.bf16.mxu0 %v433_v1  ;;  %v224_v10 = vld [vmem:[#allocation4] sm:$0xff]  ;;  %v370_v20 = vpack.c.bf16 %v227_v19, %v226_v18 }
  0x2a   :  { %357 = vmatprep.mubr.msk.f32.mxu0 %vm432_vm0, %v431_v0  ;;  %v367_v12 = vpack.c.bf16 %v225_v11, %v224_v10  ;;  %v315_v13 = vld [vmem:[%s518_s2] ss:$0 sm:$0xff] }
  0x2b   :  { %362 = vmatpush3.bf16.msra.mxu1 %v361_v6  ;;  %v317_v21 = vld [vmem:[%s520_s4] ss:$0 sm:$0xff] }
  0x2c   :  { %363 = vmatprep.subr.bf16.mxu1 %v433_v1  ;;  %368 = vmatpush3.bf16.msra.mxu0 %v367_v12  ;;  %v319_v26 = vld [vmem:[%s522_s6] ss:$0 sm:$0xff] }
  0x2d   :  { %369 = vmatprep.subr.bf16.mxu0 %v433_v1 }
  0x2f   :  { %365 = vmatpush3.bf16.msra.mxu1 %v364_v9 }
  0x30   :  { %371 = vmatpush3.bf16.msra.mxu0 %v370_v20 }
  0xfc   :  { %v133_v14 = vpop.f32.mrb[0].mxu0 }
  0xfd   :  { %v134_v15 = vadd.f32 %v315_v13, %v133_v14  ;;  %v337_v16 = vpop.f32.mrb[1].mxu0 }
  0xff   :  { %v137_v17 = vmax.f32 %v134_v15, 0.0 }
 0x101   :  { %347 = vmatmul.mubr.msk.f32.vlgmr.msra.gmra.mrb[0].mxu1 %vm149_vm2, %v137_v17 }
 0x1d4   :  { %v219_v22 = vpop.f32.mrb[0].mxu1 }
 0x1d5   :  { %v220_v23 = vadd.f32 %v317_v21, %v219_v22  ;;  %v348_v24 = vpop.f32.mrb[1].mxu1 }
 0x1d7   :  { %v223_v25 = vmax.f32 %v220_v23, 0.0 }
 0x1d9   :  { %358 = vmatmul.mubr.msk.f32.vlgmr.msra.gmra.mrb[2].mxu0 %vm149_vm2, %v223_v25 }
 0x2ac   :  { %v304_v27 = vpop.f32.mrb[2].mxu0 }
 0x2ad   :  { %v305_v28 = vadd.f32 %v319_v26, %v304_v27  ;;  %v359_v29 = vpop.f32.mrb[3].mxu0 }
 0x2af   :  { %308 = vst [vmem:[%s523_s7] sm:$0xff] %v305_v28 }
 0x2b0   :  { %313 = vsyncpa [#allocation3], 1 }
 0x2b1   :  { %314 = vsyncpa [#allocation5], 1 }

</bundles_post_ra>
